<compile_context>
chip_gen: v7x
topology: tpu7x:2x2x1
jax: 0.10.0
libtpu: 0.0.40
codegen_flags: <defaults>
</compile_context>

<pallas_src>
import math
import functools

import jax
import jax.numpy as jnp
from jax.experimental import pallas as pl
from jax.experimental.pallas import tpu as pltpu

NEG_INF = -1e30  # finite "minus infinity": 0 * NEG_INF stays finite (no NaN)


def _round_up(a, b):
    return (a + b - 1) // b * b


def _angular_loss_kernel(x_ref, w_ref, inv_x_ref, inv_w_ref, labels_ref,
                         out_ref, m_scr, l_scr, t_scr, *,
                         cos_m, sin_m, th, mm, b_valid, c_valid, mask_cols):
    i = pl.program_id(0)          # batch-tile index   ("parallel")
    c = pl.program_id(1)          # class-tile index   ("arbitrary", innermost)
    tm = x_ref.shape[0]
    tn = w_ref.shape[0]

    # ---- init online-LSE accumulators for this batch tile ----
    @pl.when(c == 0)
    def _init():
        m_scr[...] = jnp.full(m_scr.shape, NEG_INF, jnp.float32)
        l_scr[...] = jnp.zeros(l_scr.shape, jnp.float32)
        t_scr[...] = jnp.zeros(t_scr.shape, jnp.float32)

    labels = labels_ref[...]                  # (tm, 1) int32
    inv_x = inv_x_ref[...]                    # (tm, 1) f32 (precomputed)
    inv_w = inv_w_ref[...]                    # (1, tn) f32 (precomputed)

    # ---- raw logits on the MXU: bf16 operands, f32 accumulation ----
    wf = jax.lax.dot_general(x_ref[...], w_ref[...],
                             (((1,), (1,)), ((), ())),
                             preferred_element_type=jnp.float32)    # (tm, tn)
    wf = wf * inv_x * inv_w                                         # cosines

    # ---- gather target cosine; row_has via cheap label-range arithmetic ----
    col_ids = jax.lax.broadcasted_iota(jnp.int32, (1, tn), 1) + c * tn
    one_hot = col_ids == labels                                     # (tm, tn) bool
    cos_theta = jnp.sum(jnp.where(one_hot, wf, 0.0), axis=1, keepdims=True)
    row_has = jnp.logical_and(labels >= c * tn,
                              labels < (c + 1) * tn).astype(jnp.float32)  # (tm,1)

    # ---- angular margin (clamped so sqrt never sees a negative) ----
    sin_theta = jnp.sqrt(jnp.maximum(1.0 - cos_theta * cos_theta, 0.0))
    cos_theta_m = cos_theta * cos_m - sin_theta * sin_m
    cos_theta_m = jnp.where(cos_theta > th, cos_theta_m, cos_theta - mm)

    # ---- margined logits: single select; pad-column mask only if needed ----
    logits = jnp.where(one_hot, cos_theta_m, wf)                    # (tm, tn)
    if mask_cols:  # static: only when C is not a multiple of tn
        logits = jnp.where(col_ids < c_valid, logits, NEG_INF)

    # ---- online log-sum-exp across class tiles ----
    m_prev = m_scr[...]
    m_new = jnp.maximum(m_prev, jnp.max(logits, axis=1, keepdims=True))
    alpha = jnp.exp(m_prev - m_new)
    l_scr[...] = alpha * l_scr[...] + jnp.sum(jnp.exp(logits - m_new),
                                              axis=1, keepdims=True)
    m_scr[...] = m_new
    # the target logit is cos_theta_m itself (added once: the tile holding it)
    t_scr[...] = t_scr[...] + row_has * cos_theta_m

    # ---- finalize: per-example CE loss, zeroed for padded batch rows ----
    @pl.when(c == pl.num_programs(1) - 1)
    def _finalize():
        per_ex = m_scr[...] + jnp.log(l_scr[...]) - t_scr[...]      # (tm, 1)
        row_ids = jax.lax.broadcasted_iota(jnp.int32, (tm, 1), 0) + i * tm
        out_ref[...] = jnp.where(row_ids < b_valid, per_ex, 0.0)


def angular_penalty_sm_loss(x, weight, labels, m=4, *, tm=512, tn=512):
    """Forward pass of AngularPenaltySMLoss.

    x:      (B, in_features) float
    weight: (out_features, in_features) float   (nn.Linear weight, no bias)
    labels: (B,) int32
    returns scalar float32 loss (mean cross-entropy over the batch)

    Tile notes: tn must stay a multiple of 128 (lane dense); tm a multiple of
    16 (bf16 sublane packing).  Defaults fit v7x's 64 MiB VMEM under a 48 MiB
    limit even for D~4K; on v5e/v6e (128 MiB) tn=1024 is also fine.
    """
    B, D = x.shape
    C = weight.shape[0]

    cos_m = math.cos(m)
    sin_m = math.sin(m)
    th = math.cos(math.pi - m)
    mm = math.sin(math.pi - m) * m

    # lane-dense class tiles (multiple of 128); bf16-friendly batch tiles (x16)
    tm = min(tm, _round_up(B, 16))
    tn = min(tn, _round_up(C, 128))
    b_pad = _round_up(B, tm)
    c_pad = _round_up(C, tn)
    n_b = b_pad // tm
    n_c = c_pad // tn

    xf = x.astype(jnp.float32)
    wf32 = weight.astype(jnp.float32)

    # f32 inverse norms, computed once (F.normalize 1e-12 clamp for x; zero-row
    # guard for W).  Tiny side inputs -> negligible HBM traffic.
    inv_x = 1.0 / jnp.maximum(jnp.linalg.norm(xf, axis=1, keepdims=True), 1e-12)
    w_norm = jnp.linalg.norm(wf32, axis=1, keepdims=True)
    inv_w = jnp.where(w_norm > 0.0, 1.0 / jnp.maximum(w_norm, 1e-30),
                      0.0).reshape(1, C)

    # bf16 MXU streams (f32 accumulate inside the kernel)
    x_p = jnp.pad(xf, ((0, b_pad - B), (0, 0))).astype(jnp.bfloat16)
    w_p = jnp.pad(wf32, ((0, c_pad - C), (0, 0))).astype(jnp.bfloat16)
    inv_x_p = jnp.pad(inv_x, ((0, b_pad - B), (0, 0)))
    inv_w_p = jnp.pad(inv_w, ((0, 0), (0, c_pad - C)))
    labels_p = jnp.pad(labels.astype(jnp.int32), (0, b_pad - B)).reshape(b_pad, 1)

    kernel = functools.partial(_angular_loss_kernel,
                               cos_m=cos_m, sin_m=sin_m, th=th, mm=mm,
                               b_valid=B, c_valid=C, mask_cols=(c_pad != C))

    per_example = pl.pallas_call(
        kernel,
        out_shape=jax.ShapeDtypeStruct((b_pad, 1), jnp.float32),
        grid_spec=pltpu.PrefetchScalarGridSpec(
            num_scalar_prefetch=0,
            grid=(n_b, n_c),
            in_specs=[
                pl.BlockSpec((tm, D), lambda i, c: (i, 0)),   # x tile (bf16)
                pl.BlockSpec((tn, D), lambda i, c: (c, 0)),   # W tile (bf16)
                pl.BlockSpec((tm, 1), lambda i, c: (i, 0)),   # inv_x (f32)
                pl.BlockSpec((1, tn), lambda i, c: (0, c)),   # inv_w (f32)
                pl.BlockSpec((tm, 1), lambda i, c: (i, 0)),   # labels
            ],
            out_specs=pl.BlockSpec((tm, 1), lambda i, c: (i, 0)),
            scratch_shapes=[pltpu.VMEM((tm, 1), jnp.float32),   # running max
                            pltpu.VMEM((tm, 1), jnp.float32),   # running sum
                            pltpu.VMEM((tm, 1), jnp.float32)],  # target logit
        ),
        compiler_params=pltpu.CompilerParams(
            dimension_semantics=("parallel", "arbitrary"),
            # 48 MiB leaves headroom inside v7x's 64 MiB/TC while allowing
            # large double-buffered bf16 tiles on v5e/v6e as well.
            vmem_limit_bytes=48 * 1024 * 1024,
        ),
        cost_estimate=pl.CostEstimate(
            flops=2 * b_pad * c_pad * D,
            transcendentals=b_pad * c_pad,
            bytes_accessed=(x_p.size * 2                 # x, one pass
                            + w_p.size * 2 * n_b         # W, re-read per batch tile
                            + inv_w_p.size * 4 * n_b
                            + (inv_x_p.size + labels_p.size + b_pad) * 4),
        ),
    )(x_p, w_p, inv_x_p, inv_w_p, labels_p)

    return jnp.sum(per_example) / jnp.float32(B)


if __name__ == "__main__":
    in_features = 64
    out_features = 200   # padded to 256 -> 2 class tiles of 128 (online LSE + col mask)
    batch = 24           # padded to 32  -> 2 batch tiles of 16 (row mask + megacore axis)
    m = 4

    key = jax.random.PRNGKey(0)
    kx, kw, kl = jax.random.split(key, 3)

    x = jax.random.normal(kx, (batch, in_features), dtype=jnp.float32)
    bound = 1.0 / math.sqrt(in_features)  # nn.Linear-style init
    weight = jax.random.uniform(kw, (out_features, in_features),
                                minval=-bound, maxval=bound, dtype=jnp.float32)
    labels = jax.random.randint(kl, (batch,), 0, out_features, dtype=jnp.int32)

    # small tiles to exercise the multi-tile (2x2) path; production uses defaults
    loss = angular_penalty_sm_loss(x, weight, labels, m=m, tm=16, tn=128)
    jax.block_until_ready(loss)

    # pure-JAX f32 reference check (kernel streams bf16 -> relaxed tolerance)
    w_n = weight / jnp.linalg.norm(weight, axis=1, keepdims=True)
    x_n = x / jnp.maximum(jnp.linalg.norm(x, axis=1, keepdims=True), 1e-12)
    wf = x_n @ w_n.T
    cos_t = wf[jnp.arange(batch), labels][:, None]
    sin_t = jnp.sqrt(jnp.maximum(1.0 - cos_t ** 2, 0.0))
    ctm = cos_t * math.cos(m) - sin_t * math.sin(m)
    ctm = jnp.where(cos_t > math.cos(math.pi - m), ctm,
                    cos_t - math.sin(math.pi - m) * m)
    oh = jax.nn.one_hot(labels, out_features, dtype=jnp.float32)
    out_logits = oh * ctm + (1.0 - oh) * wf
    ref = jnp.mean(jax.nn.logsumexp(out_logits, axis=1)
                   - out_logits[jnp.arange(batch), labels])
    assert jnp.allclose(loss, ref, atol=1e-2, rtol=1e-3), (loss, ref)

    print("KERNEL_OK")
</pallas_src>

<mosaic_0001>
module attributes {stable_mosaic.version = 11 : i64} {
  func.func @_angular_loss_kernel(%arg0: i32, %arg1: i32, %arg2: memref<16x64xbf16, #tpu.memory_space<vmem>>, %arg3: memref<128x64xbf16, #tpu.memory_space<vmem>>, %arg4: memref<16x1xf32, #tpu.memory_space<vmem>>, %arg5: memref<1x128xf32, #tpu.memory_space<vmem>>, %arg6: memref<16x1xi32, #tpu.memory_space<vmem>>, %arg7: memref<16x1xf32, #tpu.memory_space<vmem>>, %arg8: memref<16x1xf32, #tpu.memory_space<vmem>>, %arg9: memref<16x1xf32, #tpu.memory_space<vmem>>, %arg10: memref<16x1xf32, #tpu.memory_space<vmem>>) attributes {dimension_semantics = [#tpu.dimension_semantics<parallel>, #tpu.dimension_semantics<arbitrary>], iteration_bounds = array<i64: 2, 2>, scalar_prefetch = 0 : i64, scratch_operands = 3 : i64, tpu.core_type = #tpu.core_type<tc>, window_params = [{transform_indices = @transform_0, window_bounds = array<i64: 16, 64>}, {transform_indices = @transform_1, window_bounds = array<i64: 128, 64>}, {transform_indices = @transform_2, window_bounds = array<i64: 16, 1>}, {transform_indices = @transform_3, window_bounds = array<i64: 1, 128>}, {transform_indices = @transform_4, window_bounds = array<i64: 16, 1>}, {transform_indices = @transform_5, window_bounds = array<i64: 16, 1>}]} {
    %c0_i32 = arith.constant 0 : i32
    %0 = arith.cmpi eq, %arg1, %c0_i32 : i32
    %1 = arith.extui %0 : i1 to i32
    %c0_i32_0 = arith.constant 0 : i32
    %2 = arith.cmpi ne, %1, %c0_i32_0 : i32
    scf.if %2 {
      %cst_37 = arith.constant -1.000000e+30 : f32
      %82 = vector.broadcast %cst_37 : f32 to vector<16x1xf32>
      %c0_38 = arith.constant 0 : index
      %c0_39 = arith.constant 0 : index
      %83 = vector.load %arg8[%c0_38, %c0_39] : memref<16x1xf32, #tpu.memory_space<vmem>>, vector<16x1xf32>
      tpu.vector_store %arg8[%c0_38, %c0_39], %82 {strides = array<i32>} : memref<16x1xf32, #tpu.memory_space<vmem>>, vector<16x1xf32>,
      %cst_40 = arith.constant 0.000000e+00 : f32
      %84 = vector.broadcast %cst_40 : f32 to vector<16x1xf32>
      %c0_41 = arith.constant 0 : index
      %c0_42 = arith.constant 0 : index
      %85 = vector.load %arg9[%c0_41, %c0_42] : memref<16x1xf32, #tpu.memory_space<vmem>>, vector<16x1xf32>
      tpu.vector_store %arg9[%c0_41, %c0_42], %84 {strides = array<i32>} : memref<16x1xf32, #tpu.memory_space<vmem>>, vector<16x1xf32>,
      %cst_43 = arith.constant 0.000000e+00 : f32
      %86 = vector.broadcast %cst_43 : f32 to vector<16x1xf32>
      %c0_44 = arith.constant 0 : index
      %c0_45 = arith.constant 0 : index
      %87 = vector.load %arg10[%c0_44, %c0_45] : memref<16x1xf32, #tpu.memory_space<vmem>>, vector<16x1xf32>
      tpu.vector_store %arg10[%c0_44, %c0_45], %86 {strides = array<i32>} : memref<16x1xf32, #tpu.memory_space<vmem>>, vector<16x1xf32>,
    } else {
    }
    %c0 = arith.constant 0 : index
    %c0_1 = arith.constant 0 : index
    %3 = vector.load %arg6[%c0, %c0_1] : memref<16x1xi32, #tpu.memory_space<vmem>>, vector<16x1xi32>
    %c0_2 = arith.constant 0 : index
    %c0_3 = arith.constant 0 : index
    %4 = vector.load %arg4[%c0_2, %c0_3] : memref<16x1xf32, #tpu.memory_space<vmem>>, vector<16x1xf32>
    %c0_4 = arith.constant 0 : index
    %c0_5 = arith.constant 0 : index
    %5 = vector.load %arg5[%c0_4, %c0_5] : memref<1x128xf32, #tpu.memory_space<vmem>>, vector<1x128xf32>
    %c0_6 = arith.constant 0 : index
    %c0_7 = arith.constant 0 : index
    %6 = vector.load %arg2[%c0_6, %c0_7] : memref<16x64xbf16, #tpu.memory_space<vmem>>, vector<16x64xbf16>
    %c0_8 = arith.constant 0 : index
    %c0_9 = arith.constant 0 : index
    %7 = vector.load %arg3[%c0_8, %c0_9] : memref<128x64xbf16, #tpu.memory_space<vmem>>, vector<128x64xbf16>
    %cst = arith.constant dense<0.000000e+00> : vector<16x128xf32>
    %8 = tpu.matmul %6, %7, %cst {dimension_numbers = #tpu.dot_dimension_numbers<[1], [1], [0], [0], [0, 0, 1, 0], [], []>} : vector<16x64xbf16>, vector<128x64xbf16>, vector<16x128xf32> -> vector<16x128xf32>
    %9 = vector.broadcast %4 : vector<16x1xf32> to vector<16x128xf32>
    %10 = arith.mulf %8, %9 : vector<16x128xf32>
    %11 = vector.broadcast %5 : vector<1x128xf32> to vector<16x128xf32>
    %12 = arith.mulf %10, %11 : vector<16x128xf32>
    %13 = tpu.iota {dimensions = array<i32: 1>} : vector<1x128xi32>
    %c128_i32 = arith.constant 128 : i32
    %14 = arith.muli %arg1, %c128_i32 : i32
    %15 = vector.broadcast %14 : i32 to vector<1x128xi32>
    %16 = arith.addi %13, %15 : vector<1x128xi32>
    %17 = vector.broadcast %16 : vector<1x128xi32> to vector<16x128xi32>
    %18 = vector.broadcast %3 : vector<16x1xi32> to vector<16x128xi32>
    %19 = arith.cmpi eq, %17, %18 : vector<16x128xi32>
    %cst_10 = arith.constant 0.000000e+00 : f32
    %20 = vector.broadcast %cst_10 : f32 to vector<16x128xf32>
    %21 = arith.select %19, %12, %20 : vector<16x128xi1>, vector<16x128xf32>
    %cst_11 = arith.constant dense<0.000000e+00> : vector<16xf32>
    %22 = vector.multi_reduction <add>, %21, %cst_11 [1] : vector<16x128xf32> to vector<16xf32>
    %23 = vector.shape_cast %22 : vector<16xf32> to vector<16x1xf32>
    %c128_i32_12 = arith.constant 128 : i32
    %24 = arith.muli %arg1, %c128_i32_12 : i32
    %25 = vector.broadcast %24 : i32 to vector<16x1xi32>
    %26 = arith.cmpi sge, %3, %25 : vector<16x1xi32>
    %c1_i32 = arith.constant 1 : i32
    %27 = arith.addi %arg1, %c1_i32 : i32
    %c128_i32_13 = arith.constant 128 : i32
    %28 = arith.muli %27, %c128_i32_13 : i32
    %29 = vector.broadcast %28 : i32 to vector<16x1xi32>
    %30 = arith.cmpi slt, %3, %29 : vector<16x1xi32>
    %31 = arith.andi %26, %30 : vector<16x1xi1>
    %32 = arith.extui %31 : vector<16x1xi1> to vector<16x1xi32>
    %33 = arith.sitofp %32 : vector<16x1xi32> to vector<16x1xf32>
    %34 = arith.mulf %23, %23 : vector<16x1xf32>
    %cst_14 = arith.constant 1.000000e+00 : f32
    %35 = vector.broadcast %cst_14 : f32 to vector<16x1xf32>
    %36 = arith.subf %35, %34 : vector<16x1xf32>
    %cst_15 = arith.constant 0.000000e+00 : f32
    %37 = vector.broadcast %cst_15 : f32 to vector<16x1xf32>
    %38 = arith.maximumf %36, %37 : vector<16x1xf32>
    %39 = math.sqrt %38 : vector<16x1xf32>
    %cst_16 = arith.constant -0.653643608 : f32
    %40 = vector.broadcast %cst_16 : f32 to vector<16x1xf32>
    %41 = arith.mulf %23, %40 : vector<16x1xf32>
    %cst_17 = arith.constant -0.756802499 : f32
    %42 = vector.broadcast %cst_17 : f32 to vector<16x1xf32>
    %43 = arith.mulf %39, %42 : vector<16x1xf32>
    %44 = arith.subf %41, %43 : vector<16x1xf32>
    %cst_18 = arith.constant 0.653643608 : f32
    %45 = vector.broadcast %cst_18 : f32 to vector<16x1xf32>
    %46 = arith.cmpf ogt, %23, %45 : vector<16x1xf32>
    %cst_19 = arith.constant -3.027210e+00 : f32
    %47 = vector.broadcast %cst_19 : f32 to vector<16x1xf32>
    %48 = arith.subf %23, %47 : vector<16x1xf32>
    %49 = arith.select %46, %44, %48 : vector<16x1xi1>, vector<16x1xf32>
    %50 = vector.shape_cast %49 : vector<16x1xf32> to vector<16x1xf32>
    %51 = vector.broadcast %50 : vector<16x1xf32> to vector<16x128xf32>
    %52 = arith.select %19, %51, %12 : vector<16x128xi1>, vector<16x128xf32>
    %c200_i32 = arith.constant 200 : i32
    %53 = vector.broadcast %c200_i32 : i32 to vector<1x128xi32>
    %54 = arith.cmpi slt, %16, %53 : vector<1x128xi32>
    %cst_20 = arith.constant -1.000000e+30 : f32
    %55 = vector.shape_cast %54 : vector<1x128xi1> to vector<1x128xi1>
    %56 = vector.broadcast %55 : vector<1x128xi1> to vector<16x128xi1>
    %57 = vector.broadcast %cst_20 : f32 to vector<16x128xf32>
    %58 = arith.select %56, %52, %57 : vector<16x128xi1>, vector<16x128xf32>
    %c0_21 = arith.constant 0 : index
    %c0_22 = arith.constant 0 : index
    %59 = vector.load %arg8[%c0_21, %c0_22] : memref<16x1xf32, #tpu.memory_space<vmem>>, vector<16x1xf32>
    %cst_23 = arith.constant dense<0xFF800000> : vector<16xf32>
    %60 = vector.multi_reduction <maximumf>, %58, %cst_23 [1] : vector<16x128xf32> to vector<16xf32>
    %61 = vector.shape_cast %60 : vector<16xf32> to vector<16x1xf32>
    %62 = arith.maximumf %59, %61 : vector<16x1xf32>
    %63 = arith.subf %59, %62 : vector<16x1xf32>
    %64 = math.exp %63 : vector<16x1xf32>
    %c0_24 = arith.constant 0 : index
    %c0_25 = arith.constant 0 : index
    %65 = vector.load %arg9[%c0_24, %c0_25] : memref<16x1xf32, #tpu.memory_space<vmem>>, vector<16x1xf32>
    %66 = arith.mulf %64, %65 : vector<16x1xf32>
    %67 = vector.broadcast %62 : vector<16x1xf32> to vector<16x128xf32>
    %68 = arith.subf %58, %67 : vector<16x128xf32>
    %69 = math.exp %68 : vector<16x128xf32>
    %cst_26 = arith.constant dense<0.000000e+00> : vector<16xf32>
    %70 = vector.multi_reduction <add>, %69, %cst_26 [1] : vector<16x128xf32> to vector<16xf32>
    %71 = vector.shape_cast %70 : vector<16xf32> to vector<16x1xf32>
    %72 = arith.addf %66, %71 : vector<16x1xf32>
    %c0_27 = arith.constant 0 : index
    %c0_28 = arith.constant 0 : index
    %73 = vector.load %arg9[%c0_27, %c0_28] : memref<16x1xf32, #tpu.memory_space<vmem>>, vector<16x1xf32>
    tpu.vector_store %arg9[%c0_27, %c0_28], %72 {strides = array<i32>} : memref<16x1xf32, #tpu.memory_space<vmem>>, vector<16x1xf32>,
    %c0_29 = arith.constant 0 : index
    %c0_30 = arith.constant 0 : index
    %74 = vector.load %arg8[%c0_29, %c0_30] : memref<16x1xf32, #tpu.memory_space<vmem>>, vector<16x1xf32>
    tpu.vector_store %arg8[%c0_29, %c0_30], %62 {strides = array<i32>} : memref<16x1xf32, #tpu.memory_space<vmem>>, vector<16x1xf32>,
    %c0_31 = arith.constant 0 : index
    %c0_32 = arith.constant 0 : index
    %75 = vector.load %arg10[%c0_31, %c0_32] : memref<16x1xf32, #tpu.memory_space<vmem>>, vector<16x1xf32>
    %76 = arith.mulf %33, %49 : vector<16x1xf32>
    %77 = arith.addf %75, %76 : vector<16x1xf32>
    %c0_33 = arith.constant 0 : index
    %c0_34 = arith.constant 0 : index
    %78 = vector.load %arg10[%c0_33, %c0_34] : memref<16x1xf32, #tpu.memory_space<vmem>>, vector<16x1xf32>
    tpu.vector_store %arg10[%c0_33, %c0_34], %77 {strides = array<i32>} : memref<16x1xf32, #tpu.memory_space<vmem>>, vector<16x1xf32>,
    %c1_i32_35 = arith.constant 1 : i32
    %79 = arith.cmpi eq, %arg1, %c1_i32_35 : i32
    %80 = arith.extui %79 : i1 to i32
    %c0_i32_36 = arith.constant 0 : i32
    %81 = arith.cmpi ne, %80, %c0_i32_36 : i32
    scf.if %81 {
      %c0_37 = arith.constant 0 : index
      %c0_38 = arith.constant 0 : index
      %82 = vector.load %arg8[%c0_37, %c0_38] : memref<16x1xf32, #tpu.memory_space<vmem>>, vector<16x1xf32>
      %c0_39 = arith.constant 0 : index
      %c0_40 = arith.constant 0 : index
      %83 = vector.load %arg9[%c0_39, %c0_40] : memref<16x1xf32, #tpu.memory_space<vmem>>, vector<16x1xf32>
      %84 = math.log %83 : vector<16x1xf32>
      %85 = arith.addf %82, %84 : vector<16x1xf32>
      %c0_41 = arith.constant 0 : index
      %c0_42 = arith.constant 0 : index
      %86 = vector.load %arg10[%c0_41, %c0_42] : memref<16x1xf32, #tpu.memory_space<vmem>>, vector<16x1xf32>
      %87 = arith.subf %85, %86 : vector<16x1xf32>
      %88 = tpu.iota {dimensions = array<i32: 0>} : vector<16x1xi32>
      %c16_i32 = arith.constant 16 : i32
      %89 = arith.muli %arg0, %c16_i32 : i32
      %90 = vector.broadcast %89 : i32 to vector<16x1xi32>
      %91 = arith.addi %88, %90 : vector<16x1xi32>
      %c24_i32 = arith.constant 24 : i32
      %92 = vector.broadcast %c24_i32 : i32 to vector<16x1xi32>
      %93 = arith.cmpi slt, %91, %92 : vector<16x1xi32>
      %cst_43 = arith.constant 0.000000e+00 : f32
      %94 = vector.broadcast %cst_43 : f32 to vector<16x1xf32>
      %95 = arith.select %93, %87, %94 : vector<16x1xi1>, vector<16x1xf32>
      %c0_44 = arith.constant 0 : index
      %c0_45 = arith.constant 0 : index
      %96 = vector.load %arg7[%c0_44, %c0_45] : memref<16x1xf32, #tpu.memory_space<vmem>>, vector<16x1xf32>
      tpu.vector_store %arg7[%c0_44, %c0_45], %95 {strides = array<i32>} : memref<16x1xf32, #tpu.memory_space<vmem>>, vector<16x1xf32>,
    } else {
    }
    return
  }
  func.func @transform_0(%arg0: i32, %arg1: i32) -> (i32, i32) {
    %c0_i32 = arith.constant 0 : i32
    %c0_i32_0 = arith.constant 0 : i32
    return %arg0, %c0_i32 : i32, i32
  }
  func.func @transform_1(%arg0: i32, %arg1: i32) -> (i32, i32) {
    %c0_i32 = arith.constant 0 : i32
    %c0_i32_0 = arith.constant 0 : i32
    return %arg1, %c0_i32 : i32, i32
  }
  func.func @transform_2(%arg0: i32, %arg1: i32) -> (i32, i32) {
    %c0_i32 = arith.constant 0 : i32
    %c0_i32_0 = arith.constant 0 : i32
    return %arg0, %c0_i32 : i32, i32
  }
  func.func @transform_3(%arg0: i32, %arg1: i32) -> (i32, i32) {
    %c0_i32 = arith.constant 0 : i32
    %c0_i32_0 = arith.constant 0 : i32
    return %c0_i32, %arg1 : i32, i32
  }
  func.func @transform_4(%arg0: i32, %arg1: i32) -> (i32, i32) {
    %c0_i32 = arith.constant 0 : i32
    %c0_i32_0 = arith.constant 0 : i32
    return %arg0, %c0_i32 : i32, i32
  }
  func.func @transform_5(%arg0: i32, %arg1: i32) -> (i32, i32) {
    %c0_i32 = arith.constant 0 : i32
    %c0_i32_0 = arith.constant 0 : i32
    return %arg0, %c0_i32 : i32, i32
  }
}

</mosaic_0001>

<bundles_post_ra>
// kernel: tpu_custom_call.1
= control target key start
LH: loop header
LB: loop body
LE: loop exit
PB: predicated region body
PF: predicated region fallthrough
CT: control target
= control target key end

     0   :  { %s972_s18 = smov 0   ;;  %s974_s19 = smov 0   ;;  %s1139_s0 = inlined_call_operand.vmem [shape: bf16[32,64], index: 0, kind: input, shape index: {}]   ;;  %s1140_s1 = inlined_call_operand.vmem [shape: bf16[256,64], index: 1, kind: input, shape index: {}]   ;;  %s1141_s2 = inlined_call_operand.vmem [shape: f32[32,1], index: 2, kind: input, shape index: {}]   ;;  %s1142_s3 = inlined_call_operand.vmem [shape: f32[1,256], index: 3, kind: input, shape index: {}]   ;;  %s1143_s4 = inlined_call_operand.vmem [shape: s32[32,1], index: 4, kind: input, shape index: {}]   ;;  %s1144_s5 = inlined_call_operand.vmem [shape: f32[32,1], index: 5, kind: output, shape index: {}]  }
   0x1   :  { %s976_s20 = smov 0   ;;  %s978_s21 = smov 0  }
   0x2   :  { %s980_s22 = smov 0  }
   0x3 LB: > { %s24_s23 = sadd.s32 1, %s927_s20  ;;  %s27_s24 = sadd.s32 1, %s931_s21  ;;  %s935_s22 = sphi %s980_s22, %s15_s22   ;;  %s931_s21 = sphi %s978_s21, %s1152_s21   ;;  %s927_s20 = sphi %s976_s20, %s1151_s20   ;;  %s923_s19 = sphi %s974_s19, %s1150_s19   ;;  %s919_s18 = sphi %s972_s18, %s1149_s18  }
   0x4   : > { %p25_p0 = scmp.ge.s32.totalorder %s24_s23, 2  ;;  %p761_p1 = scmp.ge.s32.totalorder %s935_s22, 1 }
   0x5   : > { %p241_p2 = scmp.lt.s32.totalorder %s935_s22, 5 }
   0x6   : > { %s1154_s23 = smov (%p25_p0, %s24_s23), 0  ;;  %s1156_s24 = smov (!%p25_p0, %s27_s24), %s931_s21 }
   0x7   : > { %p242_p3 = pnand %p761_p1, %p241_p2  ;;  %p29_p4 = scmp.ge.s32.totalorder %s1156_s24, 2 }
   0x8   : > { %s762_s25 = sshll.u32 (!%p242_p3), %s923_s19, 1  ;;  %s764_s26 = sshll.u32 (!%p242_p3), %s919_s18, 4 }
   0x9   : > { %s1158_s24 = smov (%p29_p4, %s1156_s24), 0  ;;  %245 = sbr.rel (%p242_p3) target bundleno = 943 (0x3af), region = 40 }
   0xa   : > { %p288_p5 = scmp.lt.s32.totalorder (!%p242_p3), %s762_s25, 3  ;;  %p294_p6 = scmp.lt.s32.totalorder (!%p242_p3), %s764_s26, 31 }
   0xb   : > { %p305_p7 = scmp.lt.s32.totalorder (!%p242_p3), %s919_s18, 1  ;;  %p772_p8 = scmp.ne.s32.totalorder (!%p242_p3), %s919_s18, 0 }
  0x10   : > { %s1160_s25 = smov (!%p288_p5, %s762_s25), 3  ;;  %s1162_s26 = smov (!%p294_p6, %s764_s26), 31 }
  0x11   : > { %s763_s27 = sshll.u32 %s1160_s25, 2  ;;  %s767_s28 = sshll.u32 %s1160_s25, 3  ;;  %vm325_vm0 = vcmask (!%p772_p8), 7168   ;;  %v937_v0 = vmov (!%p772_p8), -1e+30   ;;  %v938_v1 = vmov (!%p772_p8), 0.0  }
  0x12   : > { %s1012_s6 = scalar_lea.vmem %s1139_s0, %s763_s27  ;;  %s765_s7 = sshll.u32 %s1162_s26, 2  ;;  %326 = vst.msk [vmem:[#allocation2] sm:$0xff] (!%p772_p8), %vm325_vm0, %v937_v0  ;;  %327 = vst.msk [vmem:[#allocation2 + $0x8] sm:$0xff] (!%p772_p8), %vm325_vm0, %v937_v0 }
  0x13   : > { %s1017_s10 = scalar_lea.vmem %s1140_s1, %s765_s7  ;;  %s1022_s13 = scalar_lea.vmem %s1141_s2, %s767_s28  ;;  %328 = vst.msk [vmem:[#allocation3] sm:$0xff] (!%p772_p8), %vm325_vm0, %v938_v1  ;;  %329 = vst.msk [vmem:[#allocation3 + $0x8] sm:$0xff] (!%p772_p8), %vm325_vm0, %v938_v1 }
  0x14   : > { %s1025_s14 = scalar_select %p305_p7, %s919_s18, 1 }
  0x15   : > { %s1030_s17 = scalar_lea.vmem %s1143_s4, %s767_s28  ;;  %s1035_s27 = scalar_lea.vmem %s1144_s5, %s767_s28  ;;  %330 = vst.msk [vmem:[#allocation4] sm:$0xff] (!%p772_p8), %vm325_vm0, %v938_v1  ;;  %331 = vst.msk [vmem:[#allocation4 + $0x8] sm:$0xff] (!%p772_p8), %vm325_vm0, %v938_v1 }
  0x16   : > { %s307_s7 = scalar_lea.vmem %s1142_s3, %s1025_s14  ;;  %324 = sbr.rel (%p772_p8) target bundleno = 29 (0x1d), region = 44 }
  0x1d PF: > { %v872_v2 = vld [vmem:[%s1017_s10] sm:$0xff]   ;;  %v939_v3 = vmov 0.0   ;;  %vm400_vm1 = vcmask 523264   ;;  %v873_v5 = vld [vmem:[%s1017_s10 + $0x8] sm:$0xff]   ;;  %vm940_vm2 = vmmov 0   ;;  %s784_s28 = sshll.u32 %s919_s18, 7  ;;  %v489_v29 = vlaneseq }
  0x1e   : > { %805 = vmatprep.subr.bf16.mxu0 %v939_v3  ;;  %v405_v4 = vsel %vm400_vm1, %v872_v2, 0  ;;  %v408_v6 = vsel %vm400_vm1, %v873_v5, 0  ;;  %821 = vmatprep.mubr.msk.bf16.mxu0 %vm940_vm2, %v939_v3  ;;  %v334_v7 = vld [vmem:[%s1022_s13] sm:$0xff]  ;;  %v941_v9 = vmov 0   ;;  %v492_v10 = vstv %s784_s28  ;;  %s795_s8 = sadd.s32 128, %s784_s28  ;;  %v333_v11 = vld [vmem:[%s1030_s17 + $0x8] sm:$0xff] }
  0x1f   : > { %806 = vmatpush3.bf16.xpose.msra.mxu0 %v405_v4  ;;  %v332_v8 = vld [vmem:[%s1030_s17] sm:$0xff]  ;;  %870 = vset.pattern.permute.xlu0 %v941_v9  ;;  %v512_v12 = vstv %s795_s8  ;;  %vm509_vm4 = vcmp.ge.s32.totalorder %v333_v11, %v492_v10  ;;  %v874_v13 = vld [vmem:[%s1017_s10 + $0x10] sm:$0xff]   ;;  %v335_v14 = vld [vmem:[%s1022_s13 + $0x8] sm:$0xff]  ;;  %v490_v30 = vand.u32 127, %v489_v29  ;;  %vm600_vm2 = vcmask 7168   ;;  %p790_p9 = scmp.ne.s32.totalorder %s919_s18, 1 }
  0x20   : > { %807 = vmatprep.subr.bf16.mxu0 %v939_v3  ;;  %871 = vset.pattern.permute.xlu1 %v941_v9  ;;  %vm508_vm3 = vcmp.ge.s32.totalorder %v332_v8, %v492_v10  ;;  %vm513_vm5 = vcmp.lt.s32.totalorder %v332_v8, %v512_v12  ;;  %vm514_vm6 = vcmp.lt.s32.totalorder %v333_v11, %v512_v12  ;;  %v411_v17 = vsel %vm400_vm1, %v874_v13, 0  ;;  %v875_v18 = vld [vmem:[%s1017_s10 + $0x18] sm:$0xff]   ;;  %v876_v20 = vld [vmem:[%s1017_s10 + $0x20] sm:$0xff]   ;;  %v877_v22 = vld [vmem:[%s1017_s10 + $0x28] sm:$0xff]  }
  0x21   : > { %471 = vperm.xlu0 %870, %v334_v7   ;;  %495 = vperm.xlu1 %871, %v332_v8   ;;  %vm1056_vm7 = vmand %vm508_vm3, %vm513_vm5  ;;  %v414_v19 = vsel %vm400_vm1, %v875_v18, 0  ;;  %v417_v21 = vsel %vm400_vm1, %v876_v20, 0  ;;  %v420_v23 = vsel %vm400_vm1, %v877_v22, 0  ;;  %v878_v24 = vld [vmem:[%s1017_s10 + $0x30] sm:$0xff]   ;;  %v879_v26 = vld [vmem:[%s1017_s10 + $0x38] sm:$0xff]   ;;  %v1083_v33 = vadd.s32 %v492_v10, %v490_v30 }
  0x22   : > { %vm1060_vm8 = vmand %vm509_vm4, %vm514_vm6  ;;  %v423_v25 = vsel %vm400_vm1, %v878_v24, 0  ;;  %v426_v27 = vsel %vm400_vm1, %v879_v26, 0  ;;  %v880_v28 = vld [vmem:[%s1012_s6] sm:$0xff]   ;;  %v606_v20 = vld [vmem:[#allocation4 + $0x8] sm:$0xff]  ;;  %s791_s6 = sshll.u32 (!%p790_p9), %s923_s19, 4 }
  0x23   : > { %v783_v35 = vld [vmem:[%s307_s7] ss:$0 sm:$0xff]  ;;  %vm555_vm15 = vcmp.lt.s32.totalorder %v1083_v33, 200  ;;  %v561_v26 = vld [vmem:[#allocation2 + $0x8] sm:$0xff] }
  0x24   : > { %v605_v10 = vld [vmem:[#allocation4] sm:$0xff] }
  0x25   : > { %476 = vperm.xlu0 %870, %v335_v14   ;;  %498 = vperm.xlu1 %871, %v333_v11   ;;  %v787_v11 = vsel %vm1060_vm8, 1.0, %v939_v3 }
  0x27   : > { %808 = vmatpush3.bf16.xpose.msra.mxu0 %v408_v6  ;;  %v786_v6 = vsel %vm1056_vm7, 1.0, %v939_v3 }
  0x28   : > { %809 = vmatprep.subr.bf16.mxu0 %v939_v3 }
  0x2f   : > { %810 = vmatpush3.bf16.xpose.msra.mxu0 %v411_v17 }
  0x30   : > { %811 = vmatprep.subr.bf16.mxu0 %v939_v3 }
  0x37   : > { %812 = vmatpush3.bf16.xpose.msra.mxu0 %v414_v19 }
  0x38   : > { %813 = vmatprep.subr.bf16.mxu0 %v939_v3 }
  0x3f   : > { %814 = vmatpush3.bf16.xpose.msra.mxu0 %v417_v21 }
  0x40   : > { %815 = vmatprep.subr.bf16.mxu0 %v939_v3 }
  0x47   : > { %816 = vmatpush3.bf16.xpose.msra.mxu0 %v420_v23  ;;  %v560_v23 = vld [vmem:[#allocation2] sm:$0xff] }
  0x48   : > { %817 = vmatprep.subr.bf16.mxu0 %v939_v3 }
  0x4f   : > { %818 = vmatpush3.bf16.xpose.msra.mxu0 %v423_v25 }
  0x50   : > { %819 = vmatprep.subr.bf16.mxu0 %v939_v3 }
  0x57   : > { %820 = vmatpush3.bf16.xpose.msra.mxu0 %v426_v27 }
  0x5e   : > { %822 = vmatmul.mubr.msk.bf16.vlgmr.msra.gmra.mrb[0].mxu0 %vm400_vm1, %v880_v28 }
  0xa0   : > { %v472_v31 = vpop.permute.xlu0 %471  ;;  %v496_v32 = vpop.permute.xlu1 %495 }
  0xa1   : > { %vm500_vm9 = vcmp.eq.s32.totalorder %v1083_v33, %v496_v32 }
  0xa4   : > { %v477_v38 = vpop.permute.xlu0 %476  ;;  %v499_v42 = vpop.permute.xlu1 %498 }
  0xa5   : > { %vm501_vm10 = vcmp.eq.s32.totalorder %v1083_v33, %v499_v42 }
 0x131   : > { %v462_v34 = vpop.f32.mrb[0].mxu0 }
 0x132   : > { %v479_v36 = vmul.f32 %v472_v31, %v462_v34  ;;  %v823_v37 = vpop.f32.mrb[1].mxu0 }
 0x133   : > { %v465_v39 = vpop.f32.mrb[2].mxu0 }
 0x134   : > { %v480_v40 = vmul.f32 %v477_v38, %v465_v39  ;;  %v824_v41 = vpop.f32.mrb[3].mxu0  ;;  %v487_v43 = vmul.f32 %v783_v35, %v479_v36 }
 0x136   : > { %v502_v44 = vsel %vm500_vm9, %v487_v43, 0.0  ;;  %v488_v45 = vmul.f32 %v783_v35, %v480_v40 }
 0x137   : > { %504 = vadd.xlane.f32.xlu0 %v502_v44 }
 0x138   : > { %v503_v46 = vsel %vm501_vm10, %v488_v45, 0.0 }
 0x139   : > { %506 = vadd.xlane.f32.xlu1 %v503_v46 }
 0x1c4   : > { %v505_v47 = vpop.xlane.xlu0 %504 }
 0x1c5   : > { %v521_v48 = vmul.f32 %v505_v47, %v505_v47  ;;  %v541_v62 = vmul.f32 -0.6536436, %v505_v47  ;;  %v788_v4 = vadd.f32 3.02721, %v505_v47  ;;  %vm547_vm0 = vcmp.gt.f32.partialorder %v505_v47, 0.6536436 }
 0x1c6   : > { %v507_v49 = vpop.xlane.xlu1 %506  ;;  %v575_v47 = vld [vmem:[#allocation3 + $0x8] sm:$0xff] }
 0x1c7   : > { %v523_v50 = vsub.f32 1.0, %v521_v48  ;;  %v522_v51 = vmul.f32 %v507_v49, %v507_v49  ;;  %v542_v7 = vmul.f32 -0.6536436, %v507_v49  ;;  %v789_v13 = vadd.f32 3.02721, %v507_v49 }
 0x1c8   : > { %vm548_vm1 = vcmp.gt.f32.partialorder %v507_v49, 0.6536436 }
 0x1c9   : > { %v525_v52 = vmax.f32 %v523_v50, 0.0  ;;  %v524_v53 = vsub.f32 1.0, %v522_v51 }
 0x1cb   : > { %881 = vrsqrt.f32 %v525_v52  ;;  %v526_v54 = vmax.f32 %v524_v53, 0.0  ;;  %vm529_vm11 = vcmp.eq.f32.partialorder %v525_v52, inf  ;;  %v532_v57 = vand.u32 2147483648, %v525_v52 }
 0x1cc   : > { %vm531_vm12 = vcmp.eq.f32.partialorder %v525_v52, 0.0 }
 0x1cd   : > { %883 = vrsqrt.f32 %v526_v54  ;;  %vm536_vm13 = vcmp.eq.f32.partialorder %v526_v54, inf  ;;  %v539_v0 = vand.u32 2147483648, %v526_v54  ;;  %vm538_vm14 = vcmp.eq.f32.partialorder %v526_v54, 0.0 }
 0x1d5   : > { %v882_v55 = vpop.eup %881 }
 0x1d6   : > { %v528_v56 = vmul.f32 %v882_v55, %v525_v52  ;;  %v635_v55 = vstv (!%p790_p9), %s791_s6 }
 0x1d7   : > { %v884_v58 = vpop.eup %883 }
 0x1d8   : > { %v530_v59 = vsel %vm529_vm11, %v525_v52, %v528_v56  ;;  %v535_v61 = vmul.f32 %v884_v58, %v526_v54 }
 0x1d9   : > { %v533_v60 = vsel %vm531_vm12, %v532_v57, %v530_v59 }
 0x1da   : > { %v543_v63 = vmul.f32 -0.7568025, %v533_v60  ;;  %v537_v1 = vsel %vm536_vm13, %v526_v54, %v535_v61  ;;  %v632_v54 = vshrl.u32 (!%p790_p9), %v489_v29, 7 }
 0x1db   : > { %v540_v5 = vsel %vm538_vm14, %v539_v0, %v537_v1 }
 0x1dc   : > { %v545_v2 = vsub.f32 %v541_v62, %v543_v63  ;;  %v544_v8 = vmul.f32 -0.7568025, %v540_v5  ;;  %v633_v56 = vadd.s32 (!%p790_p9), 8, %v632_v54  ;;  %v636_v59 = vadd.s32 (!%p790_p9), %v635_v55, %v632_v54 }
 0x1de   : > { %v551_v9 = vsel %vm547_vm0, %v545_v2, %v788_v4  ;;  %v546_v12 = vsub.f32 %v542_v7, %v544_v8  ;;  %v637_v63 = vadd.s32 (!%p790_p9), %v635_v55, %v633_v56  ;;  %vm638_vm3 = vcmp.lt.s32.totalorder (!%p790_p9), %v636_v59, 24 }
 0x1df   : > { %v553_v14 = vsel %vm500_vm9, %v551_v9, %v487_v43  ;;  %v607_v17 = vmul.f32 %v786_v6, %v551_v9  ;;  %v574_v43 = vld [vmem:[#allocation3] sm:$0xff] }
 0x1e0   : > { %v558_v15 = vsel %vm555_vm15, %v553_v14, -1e+30  ;;  %v552_v19 = vsel %vm548_vm1, %v546_v12, %v789_v13  ;;  %vm639_vm4 = vcmp.lt.s32.totalorder (!%p790_p9), %v637_v63, 24 }
 0x1e1   : > { %562 = vmax.xlane.f32.xlu0 %v558_v15  ;;  %v609_v18 = vadd.f32 %v607_v17, %v605_v10  ;;  %v554_v21 = vsel %vm501_vm10, %v552_v19, %v488_v45  ;;  %v608_v16 = vmul.f32 %v787_v11, %v552_v19 }
 0x1e2   : > { %v559_v3 = vsel %vm555_vm15, %v554_v21, -1e+30 }
 0x1e3   : > { %611 = vst.msk [vmem:[#allocation4] sm:$0xff] %vm600_vm2, %v609_v18  ;;  %v610_v22 = vadd.f32 %v608_v16, %v606_v20 }
 0x1e5   : > { %564 = vmax.xlane.f32.xlu0 %v559_v3  ;;  %612 = vst.msk [vmem:[#allocation4 + $0x8] sm:$0xff] %vm600_vm2, %v610_v22 }
 0x1ea   : > { %v627_v0 = vld [vmem:[#allocation4] sm:$0xff] (!%p790_p9) }
 0x1ec   : > { %v628_v4 = vld [vmem:[#allocation4 + $0x8] sm:$0xff] (!%p790_p9) }
 0x26e   : > { %v563_v24 = vpop.xlane.xlu0 %562 }
 0x26f   : > { %v566_v25 = vmax.f32 %v560_v23, %v563_v24 }
 0x271   : > { %v568_v27 = vsub.f32 %v560_v23, %v566_v25  ;;  %603 = vst.msk [vmem:[#allocation2] sm:$0xff] %vm600_vm2, %v566_v25  ;;  %580 = vperm.xlu1 %871, %v566_v25  }
 0x272   : > { %v565_v28 = vpop.xlane.xlu0 %564 }
 0x273   : > { %v567_v30 = vmax.f32 %v561_v26, %v565_v28  ;;  %v570_v40 = vmul.f32 1.442695, %v568_v27 }
 0x275   : > { %v569_v31 = vsub.f32 %v561_v26, %v567_v30  ;;  %604 = vst.msk [vmem:[#allocation2 + $0x8] sm:$0xff] %vm600_vm2, %v567_v30  ;;  %585 = vperm.xlu0 %870, %v567_v30  }
 0x277   : > { %v572_v41 = vmul.f32 1.442695, %v569_v31 }
 0x278   : > { %v617_v58 = vld [vmem:[#allocation2] sm:$0xff] (!%p790_p9) }
 0x27c   : > { %v618_v62 = vld [vmem:[#allocation2 + $0x8] sm:$0xff] (!%p790_p9) }
 0x2f0   : > { %v581_v32 = vpop.permute.xlu1 %580 }
 0x2f1   : > { %v588_v33 = vsub.f32 %v558_v15, %v581_v32 }
 0x2f3   : > { %v590_v34 = vmul.f32 1.442695, %v588_v33 }
 0x2f4   : > { %v586_v35 = vpop.permute.xlu0 %585 }
 0x2f5   : > { %885 = vpow2.f32 %v590_v34  ;;  %v589_v36 = vsub.f32 %v559_v3, %v586_v35 }
 0x2f7   : > { %v592_v37 = vmul.f32 1.442695, %v589_v36 }
 0x2f9   : > { %887 = vpow2.f32 %v592_v37 }
 0x2fa   : > { %889 = vpow2.f32 %v570_v40 }
 0x2fb   : > { %891 = vpow2.f32 %v572_v41 }
 0x2ff   : > { %v886_v38 = vpop.eup %885 }
 0x300   : > { %594 = vadd.xlane.f32.xlu1 %v886_v38 }
 0x303   : > { %v888_v39 = vpop.eup %887 }
 0x304   : > { %596 = vadd.xlane.f32.xlu0 %v888_v39  ;;  %v890_v42 = vpop.eup %889 }
 0x305   : > { %v576_v44 = vmul.f32 %v890_v42, %v574_v43  ;;  %v892_v45 = vpop.eup %891 }
 0x306   : > { %v577_v49 = vmul.f32 %v892_v45, %v575_v47 }
 0x38d   : > { %v595_v46 = vpop.xlane.xlu1 %594 }
 0x38e   : > { %v598_v48 = vadd.f32 %v595_v46, %v576_v44  ;;  %616 = sbr.rel (%p790_p9) target bundleno = 943 (0x3af), region = 48 }
 0x390   : > { %601 = vst.msk [vmem:[#allocation3] sm:$0xff] %vm600_vm2, %v598_v48 }
 0x391   : > { %v597_v50 = vpop.xlane.xlu0 %596 }
 0x392   : > { %v599_v51 = vadd.f32 %v597_v50, %v577_v49 }
 0x394   : > { %602 = vst.msk [vmem:[#allocation3 + $0x8] sm:$0xff] %vm600_vm2, %v599_v51 }
 0x397   : > { %v619_v52 = vld [vmem:[#allocation3] sm:$0xff] }
 0x398   : > { %893 = vlog2.f32 %v619_v52 }
 0x39b   : > { %v620_v53 = vld [vmem:[#allocation3 + $0x8] sm:$0xff] }
 0x39c   : > { %895 = vlog2.f32 %v620_v53 }
 0x3a2   : > { %v894_v57 = vpop.eup %893 }
 0x3a3   : > { %v622_v61 = vmul.f32 0.6931472, %v894_v57 }
 0x3a5   : > { %v625_v2 = vadd.f32 %v622_v61, %v617_v58 }
 0x3a6   : > { %v896_v60 = vpop.eup %895 }
 0x3a7   : > { %v624_v1 = vmul.f32 0.6931472, %v896_v60  ;;  %v629_v6 = vsub.f32 %v625_v2, %v627_v0 }
 0x3a9   : > { %v626_v5 = vadd.f32 %v624_v1, %v618_v62  ;;  %v640_v7 = vsel %vm638_vm3, %v629_v6, 0.0 }
 0x3aa   : > { %642 = vst.msk [vmem:[%s1035_s27] sm:$0xff] %vm600_vm2, %v640_v7 }
 0x3ab   : > { %v630_v29 = vsub.f32 %v626_v5, %v628_v4 }
 0x3ad   : > { %v641_v8 = vsel %vm639_vm4, %v630_v29, 0.0 }
 0x3ae   : > { %643 = vst.msk [vmem:[%s1035_s27 + $0x8] sm:$0xff] %vm600_vm2, %v641_v8 }
 0x3af PF: > { %s15_s22 = sadd.s32 1, %s935_s22   ;;  %s1149_s18 = smov %s927_s20 }
 0x3b0   : > { %p12_p10 = scmp.ge.s32.totalorder %s15_s22, 6   ;;  %s1150_s19 = smov %s931_s21 }
 0x3b1   : > { %s1151_s20 = smov %s1154_s23  ;;  %s1152_s21 = smov %s1158_s24 }
 0x3b2   :  { %14 = sbr.rel (!%p12_p10) target bundleno = 3 (0x3), region = 90 }

</bundles_post_ra>
